<compile_context>
chip_gen: v6e
topology: v6e:2x2x1
jax: 0.10.0
libtpu: 0.0.40
codegen_flags: <defaults>
</compile_context>

<pallas_src>
import jax
import jax.numpy as jnp
from jax.experimental import pallas as pl
from jax.experimental.pallas import tpu as pltpu

BN_EPS = 1e-5
LEAKY_SLOPE = 0.1


def attention_fusion_kernel(
    x_ref,    # (B, 2D) f32  -- pre-concatenated [cnn_feat | mlp_feat]
    w1_ref,   # (2D, F) f32  -- BN-folded fusion Linear weight
    p_ref,    # (2, F)  f32  -- row 0: BN-folded bias b1, row 1: final weight w2
    b2_ref,   # (1,)    f32  -- final bias, lives in SMEM
    out_ref,  # (B, 1)  f32
):
    # Linear(2D -> F) with eval-mode BatchNorm1d pre-folded into w1 / b1.
    h = jnp.dot(x_ref[...], w1_ref[...],
                preferred_element_type=jnp.float32,
                precision=jax.lax.Precision.HIGHEST) + p_ref[0:1, :]   # (B, F)

    # LeakyReLU(0.1)
    act = jnp.where(h > 0, h, LEAKY_SLOPE * h)

    # Dropout(0.5) -> identity in eval mode.
    # TODO(synk): training-mode dropout / batch-statistics BatchNorm not implemented.

    # Linear(F -> 1): per-row lane reduction (keepdims -> lane-natural (B,1)),
    # scalar bias read from SMEM.
    out = jnp.sum(act * p_ref[1:2, :], axis=-1, keepdims=True) + b2_ref[0]
    out_ref[...] = out.astype(out_ref.dtype)


def attention_fusion(cnn_feat, mlp_feat, kernel_params):
    """kernel_params = (w1_folded (2D,F) f32, packed (2,F) f32 [b1; w2], b2 (1,) f32)."""
    w1, packed, b2 = kernel_params
    # Cheap XLA concat in the wrapper; saves one operand DMA and the in-kernel
    # lane splice.
    x = jnp.concatenate([cnn_feat, mlp_feat], axis=-1)                 # (B, 2D)
    B = x.shape[0]
    vmem = pl.BlockSpec(memory_space=pltpu.MemorySpace.VMEM)
    smem = pl.BlockSpec(memory_space=pltpu.MemorySpace.SMEM)
    out = pl.pallas_call(
        attention_fusion_kernel,
        out_shape=jax.ShapeDtypeStruct((B, 1), jnp.float32),
        in_specs=[vmem, vmem, vmem, smem],
        out_specs=vmem,
    )(x, w1, packed, b2)
    return out[:, 0]                                                   # (B,)


def init_params(key, input_dim=64, fusion_dim=128):
    """Synthetic parameters matching the PyTorch module shapes (eval mode)."""
    ks = jax.random.split(key, 8)
    D, F = input_dim, fusion_dim
    u = lambda k, shape, bound: jax.random.uniform(
        k, shape, jnp.float32, -bound, bound)

    # attention_cnn / attention_mlp: nn.Linear(D, 1) -- dead w.r.t. the output.
    w_ac = u(ks[0], (1, D), 1.0 / jnp.sqrt(D))
    b_ac = u(ks[1], (1,), 1.0 / jnp.sqrt(D))
    w_am = u(ks[2], (1, D), 1.0 / jnp.sqrt(D))
    b_am = u(ks[3], (1,), 1.0 / jnp.sqrt(D))

    # fusion_fc[0]: nn.Linear(2D, F): weight (F, 2D) stored transposed (2D, F).
    w1 = u(ks[4], (2 * D, F), 1.0 / jnp.sqrt(2 * D))
    b1 = u(ks[5], (1, F), 1.0 / jnp.sqrt(2 * D))

    # fusion_fc[1]: BatchNorm1d(F), eval-mode running stats (PyTorch defaults).
    gamma = jnp.ones((1, F), jnp.float32)
    beta = jnp.zeros((1, F), jnp.float32)
    running_mean = jnp.zeros((1, F), jnp.float32)
    running_var = jnp.ones((1, F), jnp.float32)

    # fusion_fc[4]: nn.Linear(F, 1): weight (1, F), bias (1,).
    w2 = u(ks[6], (1, F), 1.0 / jnp.sqrt(F))
    b2 = u(ks[7], (1,), 1.0 / jnp.sqrt(F))

    return dict(w_ac=w_ac, b_ac=b_ac, w_am=w_am, b_am=b_am,
                w1=w1, b1=b1, gamma=gamma, beta=beta,
                running_mean=running_mean, running_var=running_var,
                w2=w2, b2=b2)


def prepare_kernel_params(p):
    """Fold eval-mode BatchNorm into Linear(2D->F); pack small params; drop dead branch."""
    scale = p["gamma"] * jax.lax.rsqrt(p["running_var"] + BN_EPS)      # (1, F)
    w1f = p["w1"] * scale                                              # (2D, F) f32
    b1f = (p["b1"] - p["running_mean"]) * scale + p["beta"]            # (1, F)  f32
    packed = jnp.concatenate([b1f, p["w2"]], axis=0)                   # (2, F)  f32
    return (w1f, packed, p["b2"])


if __name__ == "__main__":
    key = jax.random.PRNGKey(0)
    k_cnn, k_mlp, k_par = jax.random.split(key, 3)

    B, D, F = 8, 64, 128   # module defaults: input_dim=64, fusion_dim=128
    cnn_feat = jax.random.normal(k_cnn, (B, D), jnp.float32)
    mlp_feat = jax.random.normal(k_mlp, (B, D), jnp.float32)
    params = init_params(k_par, input_dim=D, fusion_dim=F)
    kparams = prepare_kernel_params(params)

    out = attention_fusion(cnn_feat, mlp_feat, kparams)
    out = jax.block_until_ready(out)

    # Plain-JAX f32 reference following the PyTorch forward (eval mode).
    x = jnp.concatenate([cnn_feat, mlp_feat], axis=-1)
    h = jnp.dot(x, params["w1"], precision=jax.lax.Precision.HIGHEST) + params["b1"]
    h = (h - params["running_mean"]) / jnp.sqrt(params["running_var"] + BN_EPS)
    h = h * params["gamma"] + params["beta"]
    h = jnp.where(h > 0, h, LEAKY_SLOPE * h)
    ref = jnp.sum(h * params["w2"], axis=-1) + params["b2"][0]

    assert out.shape == (B,)
    assert jnp.allclose(out, ref, atol=1e-4, rtol=1e-4), (out, ref)

    print("KERNEL_OK")
</pallas_src>

<mosaic_0001>
module attributes {stable_mosaic.version = 11 : i64} {
  func.func @attention_fusion_kernel(%arg0: memref<8x128xf32, #tpu.memory_space<vmem>>, %arg1: memref<128x128xf32, #tpu.memory_space<vmem>>, %arg2: memref<2x128xf32, #tpu.memory_space<vmem>>, %arg3: memref<1xf32, #tpu.memory_space<smem>>, %arg4: memref<8x1xf32, #tpu.memory_space<vmem>>) attributes {dimension_semantics = [], scalar_prefetch = 0 : i64, scratch_operands = 0 : i64, tpu.core_type = #tpu.core_type<tc>} {
    %c0 = arith.constant 0 : index
    %c0_0 = arith.constant 0 : index
    %0 = vector.load %arg0[%c0, %c0_0] : memref<8x128xf32, #tpu.memory_space<vmem>>, vector<8x128xf32>
    %c0_1 = arith.constant 0 : index
    %c0_2 = arith.constant 0 : index
    %1 = vector.load %arg1[%c0_1, %c0_2] : memref<128x128xf32, #tpu.memory_space<vmem>>, vector<128x128xf32>
    %cst = arith.constant dense<0.000000e+00> : vector<8x128xf32>
    %2 = tpu.matmul %0, %1, %cst {dimension_numbers = #tpu.dot_dimension_numbers<[1], [0], [0], [1], [0, 0, 1, 1], [], []>, precision = #tpu.contract_precision<fp32>} : vector<8x128xf32>, vector<128x128xf32>, vector<8x128xf32> -> vector<8x128xf32>
    %c0_3 = arith.constant 0 : index
    %c0_4 = arith.constant 0 : index
    %3 = vector.load %arg2[%c0_3, %c0_4] : memref<2x128xf32, #tpu.memory_space<vmem>>, vector<1x128xf32>
    %4 = vector.broadcast %3 : vector<1x128xf32> to vector<8x128xf32>
    %5 = arith.addf %2, %4 : vector<8x128xf32>
    %cst_5 = arith.constant 0.000000e+00 : f32
    %6 = vector.broadcast %cst_5 : f32 to vector<8x128xf32>
    %7 = arith.cmpf ogt, %5, %6 : vector<8x128xf32>
    %cst_6 = arith.constant 1.000000e-01 : f32
    %8 = vector.broadcast %cst_6 : f32 to vector<8x128xf32>
    %9 = arith.mulf %8, %5 : vector<8x128xf32>
    %10 = arith.select %7, %5, %9 : vector<8x128xi1>, vector<8x128xf32>
    %c1 = arith.constant 1 : index
    %c0_7 = arith.constant 0 : index
    %11 = vector.load %arg2[%c1, %c0_7] : memref<2x128xf32, #tpu.memory_space<vmem>>, vector<1x128xf32>
    %12 = vector.broadcast %11 : vector<1x128xf32> to vector<8x128xf32>
    %13 = arith.mulf %10, %12 : vector<8x128xf32>
    %cst_8 = arith.constant dense<0.000000e+00> : vector<8xf32>
    %14 = vector.multi_reduction <add>, %13, %cst_8 [1] : vector<8x128xf32> to vector<8xf32>
    %15 = vector.shape_cast %14 : vector<8xf32> to vector<8x1xf32>
    %c0_9 = arith.constant 0 : index
    %16 = memref.load %arg3[%c0_9] : memref<1xf32, #tpu.memory_space<smem>>
    %17 = vector.broadcast %16 : f32 to vector<8x1xf32>
    %18 = arith.addf %15, %17 : vector<8x1xf32>
    %c0_10 = arith.constant 0 : index
    %c0_11 = arith.constant 0 : index
    %19 = vector.load %arg4[%c0_10, %c0_11] : memref<8x1xf32, #tpu.memory_space<vmem>>, vector<8x1xf32>
    tpu.vector_store %arg4[%c0_10, %c0_11], %18 {strides = array<i32>} : memref<8x1xf32, #tpu.memory_space<vmem>>, vector<8x1xf32>,
    return
  }
}

</mosaic_0001>

<bundles_post_ra>
// kernel: tpu_custom_call.1
= control target key start
LH: loop header
LB: loop body
LE: loop exit
PB: predicated region body
PF: predicated region fallthrough
CT: control target
= control target key end

     0   :  { %10 = vsyncpa [#allocation4], 0  ;;  %s1505_s0 = inlined_call_operand.hbm [shape: f32[8,128], index: 0, kind: input, shape index: {}]   ;;  %s1506_s1 = inlined_call_operand.hbm [shape: f32[128,128], index: 1, kind: input, shape index: {}]   ;;  %s1507_s2 = inlined_call_operand.vmem [shape: f32[2,128], index: 2, kind: input, shape index: {}]   ;;  %s1508_s3 = inlined_call_operand.<no memory space> [shape: f32[1], index: 3, kind: input, shape index: {}]   ;;  %s1509_s4 = inlined_call_operand.vmem [shape: f32[8,1], index: 4, kind: output, shape index: {}]  }
   0x1   :  { %11 = vsyncpa [#allocation6], 0  ;;  %s1093_s15 = smov [#allocation3]   ;;  %s1094_s17 = smov [#allocation5]  }
   0x2   :  { %s18_s16 = sshll.u32 %s1093_s15, 4  ;;  %s27_s18 = sshll.u32 %s1094_s17, 4  ;;  %s19_s16 = int_to_ptr.vmem [resolvable:$true] %s18_s16  ;;  %s28_s18 = int_to_ptr.vmem [resolvable:$true] %s27_s18 }
   0x3   :  { %s1057_s19 = scalar_lea.vmem %s19_s16, 128  ;;  %p1062_p1 = scmp.lt.s32.totalorder %s19_s16, %s19_s16 }
   0x4   :  { %p1058_p0 = scmp.ne.s32.totalorder %s19_s16, %s1057_s19  ;;  %p1063_p2 = scmp.lt.s32.totalorder %s1057_s19, %s1057_s19 }
   0x6   :  { %p1064_p3 = por %p1063_p2, %p1062_p1 }
   0x8   :  { %p1065_p4 = pnand %p1064_p3, %p1058_p0 }
   0xa   :  { %1068 = shalt.err (!%p1065_p4)
}
   0xb   :  { %21 = dma.hbm_to_vmem [thread:$0]  %s1505_s0, 128, %s19_s16, [#allocation4]  }
   0xc   :  { %s1077_s22 = scalar_lea.vmem %s28_s18, 2048  ;;  %p1082_p6 = scmp.lt.s32.totalorder %s28_s18, %s28_s18 }
   0xd   :  { %p1078_p5 = scmp.ne.s32.totalorder %s28_s18, %s1077_s22  ;;  %p1083_p7 = scmp.lt.s32.totalorder %s1077_s22, %s1077_s22 }
   0xf   :  { %p1084_p8 = por %p1083_p7, %p1082_p6 }
  0x11   :  { %p1085_p9 = pnand %p1084_p8, %p1078_p5 }
  0x13   :  { %1088 = shalt.err (!%p1085_p9)
}
  0x14   :  { %s1095_s23 = smov 128   ;;  %s1096_s24 = smov 8  }
  0x15   :  { %33 = dma.hbm_to_vmem [thread:$0]  %s1506_s1, 2048, %s28_s18, [#allocation6], %s1095_s23, %s1095_s23, %s1096_s24  }
  0x16   :  { %1089 = dma.done.wait [#allocation4], 128  }
  0x17   :  { %1090 = vsyncadd [#allocation4], 4294967168 }
  0x18   :  { %1091 = dma.done.wait [#allocation6], 2048  }
  0x19   :  { %1092 = vsyncadd [#allocation6], 4294965248  ;;  %v1097_v0 = vmov 0.0   ;;  %vm1098_vm0 = vmmov 0   ;;  %v60_v1 = vld [vmem:[#allocation5 + $0x78] sm:$0xff]  ;;  %v59_v2 = vld [vmem:[#allocation5 + $0x70] sm:$0xff] }
  0x1a   :  { %833 = vmatprep.subr.mxu0 %v1097_v0  ;;  %868 = vmatprep.subr.mxu1 %v1097_v0  ;;  %v58_v3 = vld [vmem:[#allocation5 + $0x68] sm:$0xff]  ;;  %v1136_v4 = vand.u32 4294901760, %v60_v1  ;;  %v1138_v5 = vand.u32 4294901760, %v59_v2  ;;  %v57_v7 = vld [vmem:[#allocation5 + $0x60] sm:$0xff]  ;;  %v56_v8 = vld [vmem:[#allocation5 + $0x58] sm:$0xff]  ;;  %vm721_vm2 = vcmask 7168  }
  0x1b   :  { %865 = vmatprep.mubr.msk.f32.mxu0 %vm1098_vm0, %v1097_v0  ;;  %900 = vmatprep.mubr.msk.f32.mxu1 %vm1098_vm0, %v1097_v0  ;;  %v1140_v6 = vand.u32 4294901760, %v58_v3  ;;  %v55_v9 = vld [vmem:[#allocation5 + $0x50] sm:$0xff]  ;;  %v1142_v10 = vand.u32 4294901760, %v57_v7  ;;  %v1144_v11 = vand.u32 4294901760, %v56_v8  ;;  %v54_v13 = vld [vmem:[#allocation5 + $0x48] sm:$0xff]  ;;  %v53_v14 = vld [vmem:[#allocation5 + $0x40] sm:$0xff] }
  0x1c   :  { %v1146_v12 = vand.u32 4294901760, %v55_v9  ;;  %834 = vmatpush3.msra.mxu0 %v1136_v4  ;;  %v1150_v15 = vsub.f32 %v60_v1, %v1136_v4  ;;  %v1153_v16 = vsub.f32 %v59_v2, %v1138_v5  ;;  %v1155_v17 = vand.u32 4294901760, %v54_v13  ;;  %v52_v19 = vld [vmem:[#allocation5 + $0x38] sm:$0xff]  ;;  %v51_v26 = vld [vmem:[#allocation5 + $0x30] sm:$0xff]  ;;  %v50_v36 = vld [vmem:[#allocation5 + $0x28] sm:$0xff] }
  0x1d   :  { %v1158_v18 = vsub.f32 %v58_v3, %v1140_v6  ;;  %835 = vmatprep.subr.mxu0 %v1097_v0  ;;  %v1162_v20 = vsub.f32 %v57_v7, %v1142_v10  ;;  %v1165_v21 = vsub.f32 %v56_v8, %v1144_v11  ;;  %v1171_v25 = vand.u32 4294901760, %v53_v14  ;;  %v49_v41 = vld [vmem:[#allocation5 + $0x20] sm:$0xff]  ;;  %v48_v49 = vld [vmem:[#allocation5 + $0x18] sm:$0xff]  ;;  %v47_v54 = vld [vmem:[#allocation5 + $0x10] sm:$0xff] }
  0x1e   :  { %836 = vmatpush3.msra.mxu0 %v1138_v5  ;;  %v160_v22 = vand.u32 4294901760, %v1150_v15  ;;  %v167_v23 = vand.u32 4294901760, %v1153_v16  ;;  %v1175_v28 = vand.u32 4294901760, %v52_v19  ;;  %v1179_v30 = vsub.f32 %v55_v9, %v1146_v12  ;;  %v44_v50 = vld [vmem:[#allocation3] sm:$0xff]  ;;  %v46_v60 = vld [vmem:[#allocation5 + $0x8] sm:$0xff]  ;;  %v45_v7 = vld [vmem:[#allocation5] sm:$0xff] }
  0x1f   :  { %v174_v24 = vand.u32 4294901760, %v1158_v18  ;;  %837 = vmatprep.subr.mxu0 %v1097_v0  ;;  %v181_v27 = vand.u32 4294901760, %v1162_v20  ;;  %v188_v29 = vand.u32 4294901760, %v1165_v21  ;;  %v1192_v34 = vsub.f32 %v54_v13, %v1155_v17 }
  0x20   :  { %838 = vmatpush3.msra.mxu0 %v1140_v6  ;;  %v161_v31 = vsub.f32 %v1150_v15, %v160_v22  ;;  %v168_v32 = vsub.f32 %v1153_v16, %v167_v23  ;;  %v1195_v35 = vand.u32 4294901760, %v51_v26  ;;  %v195_v40 = vand.u32 4294901760, %v1179_v30 }
  0x21   :  { %v175_v33 = vsub.f32 %v1158_v18, %v174_v24  ;;  %839 = vmatprep.subr.mxu0 %v1097_v0  ;;  %v182_v39 = vsub.f32 %v1162_v20, %v181_v27  ;;  %v189_v42 = vsub.f32 %v1165_v21, %v188_v29  ;;  %v1207_v43 = vsub.f32 %v53_v14, %v1171_v25 }
  0x22   :  { %840 = vmatpush3.msra.mxu0 %v1142_v10  ;;  %v162_v37 = vand.u32 4294901760, %v161_v31  ;;  %v169_v38 = vand.u32 4294901760, %v168_v32  ;;  %v1210_v45 = vand.u32 4294901760, %v50_v36  ;;  %v202_v46 = vand.u32 4294901760, %v1192_v34 }
  0x23   :  { %841 = vmatprep.subr.mxu0 %v1097_v0  ;;  %v176_v44 = vand.u32 4294901760, %v175_v33  ;;  %v1214_v47 = vsub.f32 %v52_v19, %v1175_v28  ;;  %v1218_v48 = vand.u32 4294901760, %v49_v41  ;;  %v183_v51 = vand.u32 4294901760, %v182_v39 }
  0x24   :  { %842 = vmatpush3.msra.mxu0 %v1144_v11  ;;  %869 = vmatpush3.msra.mxu1 %v162_v37  ;;  %v196_v52 = vsub.f32 %v1179_v30, %v195_v40  ;;  %v209_v53 = vand.u32 4294901760, %v1207_v43  ;;  %v1226_v55 = vsub.f32 %v51_v26, %v1195_v35  ;;  %v190_v56 = vand.u32 4294901760, %v189_v42 }
  0x25   :  { %843 = vmatprep.subr.mxu0 %v1097_v0  ;;  %870 = vmatprep.subr.mxu1 %v1097_v0  ;;  %v216_v57 = vand.u32 4294901760, %v1214_v47  ;;  %v203_v58 = vsub.f32 %v1192_v34, %v202_v46  ;;  %v1235_v59 = vand.u32 4294901760, %v48_v49  ;;  %v1238_v61 = vsub.f32 %v50_v36, %v1210_v45 }
  0x26   :  { %844 = vmatpush3.msra.mxu0 %v1146_v12  ;;  %871 = vmatpush3.msra.mxu1 %v169_v38  ;;  %v1240_v62 = vand.u32 4294901760, %v44_v50  ;;  %v1244_v63 = vand.u32 4294901760, %v47_v54  ;;  %v197_v1 = vand.u32 4294901760, %v196_v52  ;;  %v210_v2 = vsub.f32 %v1207_v43, %v209_v53 }
  0x27   :  { %845 = vmatprep.subr.mxu0 %v1097_v0  ;;  %872 = vmatprep.subr.mxu1 %v1097_v0  ;;  %v223_v3 = vand.u32 4294901760, %v1226_v55  ;;  %v1252_v8 = vsub.f32 %v49_v41, %v1218_v48  ;;  %v217_v9 = vsub.f32 %v1214_v47, %v216_v57  ;;  %v1259_v13 = vand.u32 4294901760, %v46_v60 }
  0x28   :  { %846 = vmatpush3.msra.mxu0 %v1155_v17  ;;  %873 = vmatpush3.msra.mxu1 %v176_v44  ;;  %v204_v14 = vand.u32 4294901760, %v203_v58  ;;  %v230_v19 = vand.u32 4294901760, %v1238_v61  ;;  %v1264_v26 = vsub.f32 %v44_v50, %v1240_v62  ;;  %v1267_v31 = vsub.f32 %v48_v49, %v1235_v59 }
  0x29   :  { %847 = vmatprep.subr.mxu0 %v1097_v0  ;;  %874 = vmatprep.subr.mxu1 %v1097_v0  ;;  %v1271_v32 = vand.u32 4294901760, %v45_v7  ;;  %v211_v33 = vand.u32 4294901760, %v210_v2  ;;  %v224_v36 = vsub.f32 %v1226_v55, %v223_v3  ;;  %v237_v37 = vand.u32 4294901760, %v1252_v8 }
  0x2a   :  { %848 = vmatpush3.msra.mxu0 %v1171_v25  ;;  %875 = vmatpush3.msra.mxu1 %v183_v51  ;;  %v1279_v38 = vsub.f32 %v47_v54, %v1244_v63  ;;  %v218_v39 = vand.u32 4294901760, %v217_v9  ;;  %v231_v41 = vsub.f32 %v1238_v61, %v230_v19  ;;  %v149_v42 = vand.u32 4294901760, %v1264_v26 }
  0x2b   :  { %849 = vmatprep.subr.mxu0 %v1097_v0  ;;  %876 = vmatprep.subr.mxu1 %v1097_v0  ;;  %v244_v44 = vand.u32 4294901760, %v1267_v31  ;;  %v1290_v49 = vsub.f32 %v46_v60, %v1259_v13  ;;  %v225_v50 = vand.u32 4294901760, %v224_v36  ;;  %v238_v51 = vsub.f32 %v1252_v8, %v237_v37 }
  0x2c   :  { %850 = vmatpush3.msra.mxu0 %v1175_v28  ;;  %877 = vmatpush3.msra.mxu1 %v190_v56  ;;  %v251_v52 = vand.u32 4294901760, %v1279_v38  ;;  %v1300_v54 = vsub.f32 %v45_v7, %v1271_v32  ;;  %v232_v56 = vand.u32 4294901760, %v231_v41  ;;  %v150_v58 = vsub.f32 %v1264_v26, %v149_v42 }
  0x2d   :  { %851 = vmatprep.subr.mxu0 %v1097_v0  ;;  %878 = vmatprep.subr.mxu1 %v1097_v0  ;;  %v245_v60 = vsub.f32 %v1267_v31, %v244_v44  ;;  %v239_v2 = vand.u32 4294901760, %v238_v51 }
  0x2e   :  { %852 = vmatpush3.msra.mxu0 %v1195_v35  ;;  %879 = vmatpush3.msra.mxu1 %v197_v1  ;;  %v258_v1 = vand.u32 4294901760, %v1290_v49  ;;  %v252_v7 = vsub.f32 %v1279_v38, %v251_v52  ;;  %v265_v9 = vand.u32 4294901760, %v1300_v54 }
  0x2f   :  { %853 = vmatprep.subr.mxu0 %v1097_v0  ;;  %880 = vmatprep.subr.mxu1 %v1097_v0 }
  0x30   :  { %854 = vmatpush3.msra.mxu0 %v1210_v45  ;;  %881 = vmatpush3.msra.mxu1 %v204_v14  ;;  %v151_v14 = vand.u32 4294901760, %v150_v58  ;;  %v259_v36 = vsub.f32 %v1290_v49, %v258_v1  ;;  %v266_v41 = vsub.f32 %v1300_v54, %v265_v9 }
  0x31   :  { %855 = vmatprep.subr.mxu0 %v1097_v0  ;;  %882 = vmatprep.subr.mxu1 %v1097_v0 }
  0x32   :  { %856 = vmatpush3.msra.mxu0 %v1218_v48  ;;  %883 = vmatpush3.msra.mxu1 %v211_v33  ;;  %v246_v33 = vand.u32 4294901760, %v245_v60  ;;  %v267_v51 = vand.u32 4294901760, %v266_v41 }
  0x33   :  { %857 = vmatprep.subr.mxu0 %v1097_v0  ;;  %884 = vmatprep.subr.mxu1 %v1097_v0 }
  0x34   :  { %858 = vmatpush3.msra.mxu0 %v1235_v59  ;;  %885 = vmatpush3.msra.mxu1 %v218_v39  ;;  %v253_v39 = vand.u32 4294901760, %v252_v7 }
  0x35   :  { %859 = vmatprep.subr.mxu0 %v1097_v0  ;;  %886 = vmatprep.subr.mxu1 %v1097_v0 }
  0x36   :  { %860 = vmatpush3.msra.mxu0 %v1244_v63  ;;  %887 = vmatpush3.msra.mxu1 %v225_v50  ;;  %v260_v50 = vand.u32 4294901760, %v259_v36 }
  0x37   :  { %861 = vmatprep.subr.mxu0 %v1097_v0  ;;  %888 = vmatprep.subr.mxu1 %v1097_v0 }
  0x38   :  { %862 = vmatpush3.msra.mxu0 %v1259_v13  ;;  %889 = vmatpush3.msra.mxu1 %v232_v56 }
  0x39   :  { %863 = vmatprep.subr.mxu0 %v1097_v0  ;;  %890 = vmatprep.subr.mxu1 %v1097_v0 }
  0x3a   :  { %864 = vmatpush3.msra.mxu0 %v1271_v32  ;;  %891 = vmatpush3.msra.mxu1 %v239_v2 }
  0x3b   :  { %892 = vmatprep.subr.mxu1 %v1097_v0  ;;  %903 = vmatprep.subr.mxu0 %v1097_v0 }
  0x3c   :  { %866 = vmatmul.mubr.f32.vlgmr.msra.gmra.mxu0 %v151_v14  ;;  %893 = vmatpush3.msra.mxu1 %v246_v33 }
  0x3d   :  { %904 = vmatpush3.msra.mxu0 %v1150_v15  ;;  %894 = vmatprep.subr.mxu1 %v1097_v0 }
  0x3e   :  { %905 = vmatprep.subr.mxu0 %v1097_v0  ;;  %895 = vmatpush3.msra.mxu1 %v253_v39 }
  0x3f   :  { %906 = vmatpush3.msra.mxu0 %v1153_v16  ;;  %896 = vmatprep.subr.mxu1 %v1097_v0 }
  0x40   :  { %907 = vmatprep.subr.mxu0 %v1097_v0  ;;  %897 = vmatpush3.msra.mxu1 %v260_v50 }
  0x41   :  { %908 = vmatpush3.msra.mxu0 %v1158_v18  ;;  %898 = vmatprep.subr.mxu1 %v1097_v0 }
  0x42   :  { %909 = vmatprep.subr.mxu0 %v1097_v0  ;;  %899 = vmatpush3.msra.mxu1 %v267_v51 }
  0x43   :  { %910 = vmatpush3.msra.mxu0 %v1162_v20  ;;  %901 = vmatmul.mubr.f32.vlgmr.msra.gmra.mxu1 %v1240_v62 }
  0x44   :  { %911 = vmatprep.subr.mxu0 %v1097_v0  ;;  %938 = vmatprep.subr.mxu1 %v1097_v0 }
  0x45   :  { %912 = vmatpush3.msra.mxu0 %v1165_v21  ;;  %939 = vmatpush3.msra.mxu1 %v1136_v4 }
  0x46   :  { %913 = vmatprep.subr.mxu0 %v1097_v0  ;;  %940 = vmatprep.subr.mxu1 %v1097_v0 }
  0x47   :  { %914 = vmatpush3.msra.mxu0 %v1179_v30  ;;  %941 = vmatpush3.msra.mxu1 %v1138_v5  ;;  %v730_v30 = vld [vmem:[%s1507_s2 + $0x1] ss:$0 sm:$0xff] }
  0x48   :  { %915 = vmatprep.subr.mxu0 %v1097_v0  ;;  %942 = vmatprep.subr.mxu1 %v1097_v0 }
  0x49   :  { %916 = vmatpush3.msra.mxu0 %v1192_v34  ;;  %943 = vmatpush3.msra.mxu1 %v1140_v6 }
  0x4a   :  { %917 = vmatprep.subr.mxu0 %v1097_v0  ;;  %944 = vmatprep.subr.mxu1 %v1097_v0 }
  0x4b   :  { %918 = vmatpush3.msra.mxu0 %v1207_v43  ;;  %945 = vmatpush3.msra.mxu1 %v1142_v10 }
  0x4c   :  { %919 = vmatprep.subr.mxu0 %v1097_v0  ;;  %946 = vmatprep.subr.mxu1 %v1097_v0 }
  0x4d   :  { %920 = vmatpush3.msra.mxu0 %v1214_v47  ;;  %947 = vmatpush3.msra.mxu1 %v1144_v11 }
  0x4e   :  { %921 = vmatprep.subr.mxu0 %v1097_v0  ;;  %948 = vmatprep.subr.mxu1 %v1097_v0 }
  0x4f   :  { %922 = vmatpush3.msra.mxu0 %v1226_v55  ;;  %949 = vmatpush3.msra.mxu1 %v1146_v12 }
  0x50   :  { %923 = vmatprep.subr.mxu0 %v1097_v0  ;;  %950 = vmatprep.subr.mxu1 %v1097_v0 }
  0x51   :  { %924 = vmatpush3.msra.mxu0 %v1238_v61  ;;  %951 = vmatpush3.msra.mxu1 %v1155_v17 }
  0x52   :  { %925 = vmatprep.subr.mxu0 %v1097_v0  ;;  %952 = vmatprep.subr.mxu1 %v1097_v0 }
  0x53   :  { %926 = vmatpush3.msra.mxu0 %v1252_v8  ;;  %953 = vmatpush3.msra.mxu1 %v1171_v25 }
  0x54   :  { %927 = vmatprep.subr.mxu0 %v1097_v0  ;;  %954 = vmatprep.subr.mxu1 %v1097_v0 }
  0x55   :  { %928 = vmatpush3.msra.mxu0 %v1267_v31  ;;  %955 = vmatpush3.msra.mxu1 %v1175_v28 }
  0x56   :  { %929 = vmatprep.subr.mxu0 %v1097_v0  ;;  %956 = vmatprep.subr.mxu1 %v1097_v0 }
  0x57   :  { %930 = vmatpush3.msra.mxu0 %v1279_v38  ;;  %957 = vmatpush3.msra.mxu1 %v1195_v35 }
  0x58   :  { %931 = vmatprep.subr.mxu0 %v1097_v0  ;;  %958 = vmatprep.subr.mxu1 %v1097_v0 }
  0x59   :  { %932 = vmatpush3.msra.mxu0 %v1290_v49  ;;  %959 = vmatpush3.msra.mxu1 %v1210_v45 }
  0x5a   :  { %933 = vmatprep.subr.mxu0 %v1097_v0  ;;  %960 = vmatprep.subr.mxu1 %v1097_v0 }
  0x5b   :  { %934 = vmatpush3.msra.mxu0 %v1300_v54  ;;  %935 = vmatprep.mubr.msk.f32.mxu0 %vm1098_vm0, %v1097_v0 }
  0x5c   :  { %961 = vmatpush3.msra.mxu1 %v1218_v48  ;;  %936 = vmatmul.mubr.f32.vlgmr.msra.gmra.mxu0 %v1264_v26 }
  0x5d   :  { %962 = vmatprep.subr.mxu1 %v1097_v0  ;;  %973 = vmatprep.subr.mxu0 %v1097_v0 }
  0x5e   :  { %963 = vmatpush3.msra.mxu1 %v1235_v59  ;;  %974 = vmatpush3.msra.mxu0 %v160_v22 }
  0x5f   :  { %964 = vmatprep.subr.mxu1 %v1097_v0  ;;  %975 = vmatprep.subr.mxu0 %v1097_v0 }
  0x60   :  { %965 = vmatpush3.msra.mxu1 %v1244_v63  ;;  %976 = vmatpush3.msra.mxu0 %v167_v23 }
  0x61   :  { %966 = vmatprep.subr.mxu1 %v1097_v0  ;;  %977 = vmatprep.subr.mxu0 %v1097_v0 }
  0x62   :  { %967 = vmatpush3.msra.mxu1 %v1259_v13  ;;  %978 = vmatpush3.msra.mxu0 %v174_v24 }
  0x63   :  { %968 = vmatprep.subr.mxu1 %v1097_v0  ;;  %979 = vmatprep.subr.mxu0 %v1097_v0 }
  0x64   :  { %969 = vmatpush3.msra.mxu1 %v1271_v32  ;;  %970 = vmatprep.mubr.msk.f32.mxu1 %vm1098_vm0, %v1097_v0 }
  0x65   :  { %980 = vmatpush3.msra.mxu0 %v181_v27  ;;  %971 = vmatmul.mubr.f32.vlgmr.msra.gmra.mxu1 %v149_v42 }
  0x66   :  { %981 = vmatprep.subr.mxu0 %v1097_v0  ;;  %1008 = vmatprep.subr.mxu1 %v1097_v0 }
  0x67   :  { %982 = vmatpush3.msra.mxu0 %v188_v29  ;;  %1009 = vmatpush3.msra.mxu1 %v1136_v4 }
  0x68   :  { %983 = vmatprep.subr.mxu0 %v1097_v0  ;;  %1010 = vmatprep.subr.mxu1 %v1097_v0 }
  0x69   :  { %984 = vmatpush3.msra.mxu0 %v195_v40  ;;  %1011 = vmatpush3.msra.mxu1 %v1138_v5  ;;  %v719_v40 = vstv %s1508_s3 }
  0x6a   :  { %985 = vmatprep.subr.mxu0 %v1097_v0  ;;  %1012 = vmatprep.subr.mxu1 %v1097_v0 }
  0x6b   :  { %986 = vmatpush3.msra.mxu0 %v202_v46  ;;  %1013 = vmatpush3.msra.mxu1 %v1140_v6 }
  0x6c   :  { %987 = vmatprep.subr.mxu0 %v1097_v0  ;;  %1014 = vmatprep.subr.mxu1 %v1097_v0 }
  0x6d   :  { %988 = vmatpush3.msra.mxu0 %v209_v53  ;;  %1015 = vmatpush3.msra.mxu1 %v1142_v10 }
  0x6e   :  { %989 = vmatprep.subr.mxu0 %v1097_v0  ;;  %1016 = vmatprep.subr.mxu1 %v1097_v0 }
  0x6f   :  { %990 = vmatpush3.msra.mxu0 %v216_v57  ;;  %1017 = vmatpush3.msra.mxu1 %v1144_v11 }
  0x70   :  { %991 = vmatprep.subr.mxu0 %v1097_v0  ;;  %1018 = vmatprep.subr.mxu1 %v1097_v0 }
  0x71   :  { %992 = vmatpush3.msra.mxu0 %v223_v3  ;;  %1019 = vmatpush3.msra.mxu1 %v1146_v12 }
  0x72   :  { %993 = vmatprep.subr.mxu0 %v1097_v0  ;;  %1020 = vmatprep.subr.mxu1 %v1097_v0 }
  0x73   :  { %994 = vmatpush3.msra.mxu0 %v230_v19  ;;  %1021 = vmatpush3.msra.mxu1 %v1155_v17  ;;  %v729_v17 = vld [vmem:[%s1507_s2] ss:$0 sm:$0xff] }
  0x74   :  { %995 = vmatprep.subr.mxu0 %v1097_v0  ;;  %1022 = vmatprep.subr.mxu1 %v1097_v0 }
  0x75   :  { %996 = vmatpush3.msra.mxu0 %v237_v37  ;;  %1023 = vmatpush3.msra.mxu1 %v1171_v25 }
  0x76   :  { %997 = vmatprep.subr.mxu0 %v1097_v0  ;;  %1024 = vmatprep.subr.mxu1 %v1097_v0 }
  0x77   :  { %998 = vmatpush3.msra.mxu0 %v244_v44  ;;  %1025 = vmatpush3.msra.mxu1 %v1175_v28 }
  0x78   :  { %999 = vmatprep.subr.mxu0 %v1097_v0  ;;  %1026 = vmatprep.subr.mxu1 %v1097_v0 }
  0x79   :  { %1000 = vmatpush3.msra.mxu0 %v251_v52  ;;  %1027 = vmatpush3.msra.mxu1 %v1195_v35 }
  0x7a   :  { %1001 = vmatprep.subr.mxu0 %v1097_v0  ;;  %1028 = vmatprep.subr.mxu1 %v1097_v0 }
  0x7b   :  { %1002 = vmatpush3.msra.mxu0 %v258_v1  ;;  %1029 = vmatpush3.msra.mxu1 %v1210_v45 }
  0x7c   :  { %1003 = vmatprep.subr.mxu0 %v1097_v0  ;;  %1030 = vmatprep.subr.mxu1 %v1097_v0 }
  0x7d   :  { %1004 = vmatpush3.msra.mxu0 %v265_v9  ;;  %1005 = vmatprep.mubr.msk.f32.mxu0 %vm1098_vm0, %v1097_v0 }
  0x7e   :  { %1031 = vmatpush3.msra.mxu1 %v1218_v48  ;;  %1006 = vmatmul.mubr.f32.vlgmr.msra.gmra.mxu0 %v1240_v62 }
  0x7f   :  { %1032 = vmatprep.subr.mxu1 %v1097_v0  ;;  %1040 = vmatprep.mubr.msk.f32.mxu1 %vm1098_vm0, %v1097_v0 }
  0x80   :  { %1033 = vmatpush3.msra.mxu1 %v1235_v59 }
  0x81   :  { %1034 = vmatprep.subr.mxu1 %v1097_v0 }
  0x82   :  { %1035 = vmatpush3.msra.mxu1 %v1244_v63 }
  0x83   :  { %1036 = vmatprep.subr.mxu1 %v1097_v0 }
  0x84   :  { %1037 = vmatpush3.msra.mxu1 %v1259_v13 }
  0x85   :  { %1038 = vmatprep.subr.mxu1 %v1097_v0 }
  0x86   :  { %1039 = vmatpush3.msra.mxu1 %v1271_v32 }
  0x87   :  { %1041 = vmatmul.mubr.f32.vlgmr.msra.gmra.mxu1 %v1240_v62 }
  0xfc   :  { %v153_v4 = vpop.f32.mrf.mxu0 }
  0xfd   :  { %v154_v18 = vadd.f32 %v729_v17, %v153_v4 }
  0xfe   :  { %v867_v5 = vpop.f32.mrf.mxu0 }
 0x103   :  { %v304_v6 = vpop.f32.mrf.mxu1 }
 0x104   :  { %v305_v21 = vadd.f32 %v304_v6, %v154_v18 }
 0x105   :  { %v902_v10 = vpop.f32.mrf.mxu1 }
 0x11c   :  { %v408_v11 = vpop.f32.mrf.mxu0 }
 0x11d   :  { %v409_v22 = vadd.f32 %v408_v11, %v305_v21 }
 0x11e   :  { %v937_v12 = vpop.f32.mrf.mxu0 }
 0x125   :  { %v497_v15 = vpop.f32.mrf.mxu1 }
 0x126   :  { %v498_v23 = vadd.f32 %v497_v15, %v409_v22 }
 0x127   :  { %v972_v16 = vpop.f32.mrf.mxu1 }
 0x13e   :  { %v616_v20 = vpop.f32.mrf.mxu0 }
 0x13f   :  { %v617_v24 = vadd.f32 %v616_v20, %v498_v23 }
 0x140   :  { %v1007_v0 = vpop.f32.mrf.mxu0 }
 0x147   :  { %v703_v25 = vpop.f32.mrf.mxu1 }
 0x148   :  { %v704_v27 = vadd.f32 %v703_v25, %v617_v24 }
 0x149   :  { %v1042_v28 = vpop.f32.mrf.mxu1 }
 0x14a   :  { %v708_v29 = vmul.f32 0.1, %v704_v27  ;;  %vm707_vm1 = vcmp.gt.f32.partialorder %v704_v27, 0.0 }
 0x14c   :  { %v709_v34 = vsel %vm707_vm1, %v704_v27, %v708_v29 }
 0x14d   :  { %v715_v35 = vmul.f32 %v730_v30, %v709_v34 }
 0x14f   :  { %716 = vadd.xlane.f32.xlu0 %v715_v35 }
 0x1d8   :  { %v717_v43 = vpop.xlane.xlu0 %716 }
 0x1d9   :  { %v720_v45 = vadd.f32 %v719_v40, %v717_v43 }
 0x1db   :  { %722 = vst.msk [vmem:[%s1509_s4] sm:$0xff] %vm721_vm2, %v720_v45 }
 0x1dc   :  { %727 = vsyncpa [#allocation4], 1 }
 0x1dd   :  { %728 = vsyncpa [#allocation6], 1 }

</bundles_post_ra>
